<compile_context>
chip_gen: v7x
topology: tpu7x:2x2x1
jax: 0.10.0
libtpu: 0.0.40
codegen_flags: <defaults>
</compile_context>

<pallas_src>
import functools

import jax
import jax.numpy as jnp
from jax.experimental import pallas as pl
from jax.experimental.pallas import tpu as pltpu

_SQRT_HALF = 0.7071067811865476  # 1/sqrt(2)


def _gelu_exact(x):
    # PyTorch nn.GELU() default = exact erf formulation (evaluated in f32).
    return 0.5 * x * (1.0 + jax.lax.erf(x * _SQRT_HALF))


def _audio_mlp_kernel(x_ref, w1_ref, b1_ref, w2_ref, b2_ref, o_ref):
    # x_ref:  (TM, D_in)
    # w1_ref: (D_in, D_hid)   b1_ref: (1, D_hid)
    # w2_ref: (D_hid, D_out)  b2_ref: (1, D_out)
    # o_ref:  (TM, D_out)
    #
    # First linear: MXU in native operand dtype, f32 accumulation.
    h = jnp.dot(x_ref[...], w1_ref[...], preferred_element_type=jnp.float32)
    h = h + b1_ref[...].astype(jnp.float32)
    h = _gelu_exact(h)

    # Second linear: cast activation to the weight dtype (no-op for f32,
    # bf16 MXU fast path for bf16 weights), accumulate in f32.
    y = jnp.dot(h.astype(w2_ref.dtype), w2_ref[...],
                preferred_element_type=jnp.float32)
    y = y + b2_ref[...].astype(jnp.float32)

    o_ref[...] = y.astype(o_ref.dtype)


def _round_up(n, m):
    return ((n + m - 1) // m) * m


@functools.partial(jax.jit, static_argnames=("tile_m",))
def audio_mlp(x, w1, b1, w2, b2, *, tile_m=512):
    """x: (..., D_in) -> (..., D_out). Whole MLP runs inside one Pallas kernel."""
    orig_shape = x.shape
    d_in = orig_shape[-1]
    d_hid = w1.shape[1]
    d_out = w2.shape[1]

    x2d = x.reshape(-1, d_in)
    rows = x2d.shape[0]

    # Sublane alignment for the row tile: 8 for 32-bit, 16 for bf16, 32 for 8-bit.
    packing = max(1, 4 // jnp.dtype(x.dtype).itemsize)
    min_tile = 8 * packing

    # Clamp the row tile to the (aligned) row count; no HBM-side padding.
    tm = min(_round_up(tile_m, min_tile), _round_up(rows, min_tile))
    grid = (pl.cdiv(rows, tm),)

    b1_2d = b1.reshape(1, d_hid)
    b2_2d = b2.reshape(1, d_out)

    # Advisory cost estimate for the XLA scheduler.
    flops = 2 * rows * (d_in * d_hid + d_hid * d_out)
    bytes_accessed = (
        x2d.size * x2d.dtype.itemsize
        + w1.size * w1.dtype.itemsize + b1.size * b1.dtype.itemsize
        + w2.size * w2.dtype.itemsize + b2.size * b2.dtype.itemsize
        + rows * d_out * jnp.dtype(x.dtype).itemsize
    )
    cost = pl.CostEstimate(flops=flops,
                           transcendentals=rows * d_hid,
                           bytes_accessed=bytes_accessed)

    out = pl.pallas_call(
        _audio_mlp_kernel,
        out_shape=jax.ShapeDtypeStruct((rows, d_out), x.dtype),
        grid_spec=pltpu.PrefetchScalarGridSpec(
            num_scalar_prefetch=0,
            grid=grid,
            in_specs=[
                pl.BlockSpec((tm, d_in), lambda i: (i, 0)),      # x tile
                pl.BlockSpec((d_in, d_hid), lambda i: (0, 0)),   # W1 (resident)
                pl.BlockSpec((1, d_hid), lambda i: (0, 0)),      # b1
                pl.BlockSpec((d_hid, d_out), lambda i: (0, 0)),  # W2 (resident)
                pl.BlockSpec((1, d_out), lambda i: (0, 0)),      # b2
            ],
            out_specs=pl.BlockSpec((tm, d_out), lambda i: (i, 0)),
        ),
        compiler_params=pltpu.CompilerParams(
            dimension_semantics=("parallel",),
            vmem_limit_bytes=48 * 1024 * 1024,
        ),
        cost_estimate=cost,
    )(x2d, w1, b1_2d, w2, b2_2d)

    return out.reshape(orig_shape[:-1] + (d_out,))


def _reference(x, w1, b1, w2, b2):
    h = jnp.dot(x, w1) + b1
    h = _gelu_exact(h)
    return jnp.dot(h, w2) + b2


if __name__ == "__main__":
    # Small shapes consistent with the module's forward: (batch, seq, input_dim).
    batch, seq = 2, 8
    input_dim, output_dim = 256, 128

    key = jax.random.PRNGKey(0)
    kx, kw1, kb1, kw2, kb2 = jax.random.split(key, 5)

    x = jax.random.normal(kx, (batch, seq, input_dim), dtype=jnp.float32)

    # Deterministic parameter init (uniform with nn.Linear-like scale).
    lim1 = 1.0 / jnp.sqrt(input_dim)
    lim2 = 1.0 / jnp.sqrt(output_dim)
    w1 = jax.random.uniform(kw1, (input_dim, output_dim), jnp.float32, -lim1, lim1)
    b1 = jax.random.uniform(kb1, (output_dim,), jnp.float32, -lim1, lim1)
    w2 = jax.random.uniform(kw2, (output_dim, output_dim), jnp.float32, -lim2, lim2)
    b2 = jax.random.uniform(kb2, (output_dim,), jnp.float32, -lim2, lim2)

    y = audio_mlp(x, w1, b1, w2, b2)
    jax.block_until_ready(y)

    y_ref = _reference(x, w1, b1, w2, b2)
    assert y.shape == (batch, seq, output_dim), y.shape
    assert jnp.allclose(y, y_ref, atol=1e-4, rtol=1e-4), \
        float(jnp.max(jnp.abs(y - y_ref)))

    print("KERNEL_OK")
</pallas_src>

<mosaic_0001>
module attributes {stable_mosaic.version = 11 : i64} {
  func.func @_audio_mlp_kernel(%arg0: i32, %arg1: memref<16x256xf32, #tpu.memory_space<vmem>>, %arg2: memref<256x128xf32, #tpu.memory_space<vmem>>, %arg3: memref<1x128xf32, #tpu.memory_space<vmem>>, %arg4: memref<128x128xf32, #tpu.memory_space<vmem>>, %arg5: memref<1x128xf32, #tpu.memory_space<vmem>>, %arg6: memref<16x128xf32, #tpu.memory_space<vmem>>) attributes {dimension_semantics = [#tpu.dimension_semantics<parallel>], iteration_bounds = array<i64: 1>, scalar_prefetch = 0 : i64, scratch_operands = 0 : i64, tpu.core_type = #tpu.core_type<tc>, window_params = [{transform_indices = @transform_0, window_bounds = array<i64: 16, 256>}, {pipeline_mode = #tpu.pipeline_mode<synchronous>, transform_indices = @transform_1, window_bounds = array<i64: 256, 128>}, {pipeline_mode = #tpu.pipeline_mode<synchronous>, transform_indices = @transform_2, window_bounds = array<i64: 1, 128>}, {pipeline_mode = #tpu.pipeline_mode<synchronous>, transform_indices = @transform_3, window_bounds = array<i64: 128, 128>}, {pipeline_mode = #tpu.pipeline_mode<synchronous>, transform_indices = @transform_4, window_bounds = array<i64: 1, 128>}, {transform_indices = @transform_5, window_bounds = array<i64: 16, 128>}]} {
    %c0 = arith.constant 0 : index
    %c0_0 = arith.constant 0 : index
    %0 = vector.load %arg1[%c0, %c0_0] : memref<16x256xf32, #tpu.memory_space<vmem>>, vector<16x256xf32>
    %c0_1 = arith.constant 0 : index
    %c0_2 = arith.constant 0 : index
    %1 = vector.load %arg2[%c0_1, %c0_2] : memref<256x128xf32, #tpu.memory_space<vmem>>, vector<256x128xf32>
    %cst = arith.constant dense<0.000000e+00> : vector<16x128xf32>
    %2 = tpu.matmul %0, %1, %cst {dimension_numbers = #tpu.dot_dimension_numbers<[1], [0], [0], [1], [0, 0, 1, 1], [], []>} : vector<16x256xf32>, vector<256x128xf32>, vector<16x128xf32> -> vector<16x128xf32>
    %c0_3 = arith.constant 0 : index
    %c0_4 = arith.constant 0 : index
    %3 = vector.load %arg3[%c0_3, %c0_4] : memref<1x128xf32, #tpu.memory_space<vmem>>, vector<1x128xf32>
    %4 = vector.broadcast %3 : vector<1x128xf32> to vector<16x128xf32>
    %5 = arith.addf %2, %4 : vector<16x128xf32>
    %cst_5 = arith.constant 5.000000e-01 : f32
    %6 = vector.broadcast %cst_5 : f32 to vector<16x128xf32>
    %7 = arith.mulf %6, %5 : vector<16x128xf32>
    %cst_6 = arith.constant 0.707106769 : f32
    %8 = vector.broadcast %cst_6 : f32 to vector<16x128xf32>
    %9 = arith.mulf %5, %8 : vector<16x128xf32>
    %10 = math.erf %9 : vector<16x128xf32>
    %cst_7 = arith.constant 1.000000e+00 : f32
    %11 = vector.broadcast %cst_7 : f32 to vector<16x128xf32>
    %12 = arith.addf %11, %10 : vector<16x128xf32>
    %13 = arith.mulf %7, %12 : vector<16x128xf32>
    %c0_8 = arith.constant 0 : index
    %c0_9 = arith.constant 0 : index
    %14 = vector.load %arg4[%c0_8, %c0_9] : memref<128x128xf32, #tpu.memory_space<vmem>>, vector<128x128xf32>
    %cst_10 = arith.constant dense<0.000000e+00> : vector<16x128xf32>
    %15 = tpu.matmul %13, %14, %cst_10 {dimension_numbers = #tpu.dot_dimension_numbers<[1], [0], [0], [1], [0, 0, 1, 1], [], []>} : vector<16x128xf32>, vector<128x128xf32>, vector<16x128xf32> -> vector<16x128xf32>
    %c0_11 = arith.constant 0 : index
    %c0_12 = arith.constant 0 : index
    %16 = vector.load %arg5[%c0_11, %c0_12] : memref<1x128xf32, #tpu.memory_space<vmem>>, vector<1x128xf32>
    %17 = vector.broadcast %16 : vector<1x128xf32> to vector<16x128xf32>
    %18 = arith.addf %15, %17 : vector<16x128xf32>
    %c0_13 = arith.constant 0 : index
    %c0_14 = arith.constant 0 : index
    %19 = vector.load %arg6[%c0_13, %c0_14] : memref<16x128xf32, #tpu.memory_space<vmem>>, vector<16x128xf32>
    tpu.vector_store %arg6[%c0_13, %c0_14], %18 {strides = array<i32>} : memref<16x128xf32, #tpu.memory_space<vmem>>, vector<16x128xf32>,
    return
  }
  func.func @transform_0(%arg0: i32) -> (i32, i32) {
    %c0_i32 = arith.constant 0 : i32
    %c0_i32_0 = arith.constant 0 : i32
    return %arg0, %c0_i32 : i32, i32
  }
  func.func @transform_1(%arg0: i32) -> (i32, i32) {
    %c0_i32 = arith.constant 0 : i32
    %c0_i32_0 = arith.constant 0 : i32
    %c0_i32_1 = arith.constant 0 : i32
    return %c0_i32, %c0_i32_0 : i32, i32
  }
  func.func @transform_2(%arg0: i32) -> (i32, i32) {
    %c0_i32 = arith.constant 0 : i32
    %c0_i32_0 = arith.constant 0 : i32
    %c0_i32_1 = arith.constant 0 : i32
    return %c0_i32, %c0_i32_0 : i32, i32
  }
  func.func @transform_3(%arg0: i32) -> (i32, i32) {
    %c0_i32 = arith.constant 0 : i32
    %c0_i32_0 = arith.constant 0 : i32
    %c0_i32_1 = arith.constant 0 : i32
    return %c0_i32, %c0_i32_0 : i32, i32
  }
  func.func @transform_4(%arg0: i32) -> (i32, i32) {
    %c0_i32 = arith.constant 0 : i32
    %c0_i32_0 = arith.constant 0 : i32
    %c0_i32_1 = arith.constant 0 : i32
    return %c0_i32, %c0_i32_0 : i32, i32
  }
  func.func @transform_5(%arg0: i32) -> (i32, i32) {
    %c0_i32 = arith.constant 0 : i32
    %c0_i32_0 = arith.constant 0 : i32
    return %arg0, %c0_i32 : i32, i32
  }
}

</mosaic_0001>

<bundles_post_ra>
// kernel: audio_mlp.1
= control target key start
LH: loop header
LB: loop body
LE: loop exit
PB: predicated region body
PF: predicated region fallthrough
CT: control target
= control target key end

     0   :  { %10 = vsyncpa [#allocation3], 0  ;;  %s672_s0 = inlined_call_operand.hbm [shape: f32[16,256], index: 0, kind: input, shape index: {}]   ;;  %s673_s1 = inlined_call_operand.hbm [shape: f32[256,128], index: 1, kind: input, shape index: {}]   ;;  %s674_s2 = inlined_call_operand.vmem [shape: f32[1,128], index: 2, kind: input, shape index: {}]   ;;  %s675_s3 = inlined_call_operand.hbm [shape: f32[128,128], index: 3, kind: input, shape index: {}]   ;;  %s676_s4 = inlined_call_operand.vmem [shape: f32[1,128], index: 4, kind: input, shape index: {}]   ;;  %s677_s5 = inlined_call_operand.hbm [shape: f32[16,128], index: 5, kind: output, shape index: {}]  }
   0x1   :  { %11 = vsyncpa [#allocation6], 0 }
   0x2   :  { %12 = vsyncpa [#allocation4], 0  ;;  %s571_s18 = smov [#allocation5]   ;;  %s477_s22 = scalar_lea.hbm %s673_s1, 4096 }
   0x3   :  { %s30_s19 = sshll.u32 %s571_s18, 4  ;;  %p478_p0 = scmp.ne.s32.totalorder %s673_s1, %s477_s22  ;;  %s31_s19 = int_to_ptr.vmem [resolvable:$true] %s30_s19 }
   0x4   :  { %p481_p1 = scmp.lt.u32.totalorder %s477_s22, %s673_s1 }
   0x6   :  { %p483_p2 = pnand %p481_p1, %p478_p0 }
   0x8   :  { %486 = shalt.err (!%p483_p2)
}
   0x9   :  { %s487_s27 = scalar_lea.vmem %s31_s19, 4096  ;;  %p492_p4 = scmp.lt.s32.totalorder %s31_s19, %s31_s19 }
   0xa   :  { %p488_p3 = scmp.ne.s32.totalorder %s31_s19, %s487_s27  ;;  %p493_p5 = scmp.lt.s32.totalorder %s487_s27, %s487_s27 }
   0xc   :  { %p494_p6 = por %p493_p5, %p492_p4 }
   0xe   :  { %p495_p7 = pnand %p494_p6, %p488_p3 }
  0x10   :  { %498 = shalt.err (!%p495_p7)
}
  0x11   :  { %s572_s28 = smov 128   ;;  %s573_s29 = smov 8  }
  0x12   :  { %36 = dma.hbm_to_vmem [thread:$0]  %s673_s1, 4096, %s31_s19, [#allocation6], %s572_s28, %s572_s28, %s573_s29  }
  0x13   :  { %s574_s7 = smov [#allocation2]   ;;  %s499_s11 = scalar_lea.hbm %s672_s0, 512 }
  0x14   :  { %s18_s8 = sshll.u32 %s574_s7, 4  ;;  %p500_p8 = scmp.ne.s32.totalorder %s672_s0, %s499_s11  ;;  %s19_s8 = int_to_ptr.vmem [resolvable:$true] %s18_s8 }
  0x15   :  { %p503_p9 = scmp.lt.u32.totalorder %s499_s11, %s672_s0 }
  0x17   :  { %p505_p10 = pnand %p503_p9, %p500_p8 }
  0x19   :  { %508 = shalt.err (!%p505_p10)
}
  0x1a   :  { %s509_s16 = scalar_lea.vmem %s19_s8, 512  ;;  %p514_p12 = scmp.lt.s32.totalorder %s19_s8, %s19_s8 }
  0x1b   :  { %p510_p11 = scmp.ne.s32.totalorder %s19_s8, %s509_s16  ;;  %p515_p13 = scmp.lt.s32.totalorder %s509_s16, %s509_s16 }
  0x1d   :  { %p516_p0 = por %p515_p13, %p514_p12 }
  0x1f   :  { %p517_p1 = pnand %p516_p0, %p510_p11 }
  0x21   :  { %520 = shalt.err (!%p517_p1)
}
  0x22   :  { %s575_s1 = smov 256   ;;  %s576_s17 = smov 16  }
  0x23   :  { %24 = dma.hbm_to_vmem [thread:$0]  %s672_s0, 512, %s19_s8, [#allocation3], %s575_s1, %s575_s1, %s576_s17  }
  0x24   :  { %s577_s20 = smov [#allocation7]   ;;  %s521_s24 = scalar_lea.hbm %s675_s3, 2048 }
  0x25   :  { %s44_s21 = sshll.u32 %s577_s20, 4  ;;  %p522_p2 = scmp.ne.s32.totalorder %s675_s3, %s521_s24  ;;  %s45_s21 = int_to_ptr.vmem [resolvable:$true] %s44_s21 }
  0x26   :  { %p525_p3 = scmp.lt.u32.totalorder %s521_s24, %s675_s3 }
  0x28   :  { %p527_p4 = pnand %p525_p3, %p522_p2 }
  0x2a   :  { %530 = shalt.err (!%p527_p4)
}
  0x2b   :  { %s531_s6 = scalar_lea.vmem %s45_s21, 2048  ;;  %p536_p6 = scmp.lt.s32.totalorder %s45_s21, %s45_s21 }
  0x2c   :  { %p532_p5 = scmp.ne.s32.totalorder %s45_s21, %s531_s6  ;;  %p537_p7 = scmp.lt.s32.totalorder %s531_s6, %s531_s6 }
  0x2e   :  { %p538_p8 = por %p537_p7, %p536_p6 }
  0x30   :  { %p539_p9 = pnand %p538_p8, %p532_p5 }
  0x32   :  { %542 = shalt.err (!%p539_p9)
}
  0x33   :  { %50 = dma.hbm_to_vmem [thread:$0]  %s675_s3, 2048, %s45_s21, [#allocation6], %s572_s28, %s572_s28, %s573_s29  }
  0x34   :  { %565 = dma.done.wait [#allocation3], 512  }
  0x35   :  { %566 = vsyncadd [#allocation3], 4294966784 }
  0x36   :  { %567 = dma.done.wait [#allocation6], 6144  }
  0x37   :  { %568 = vsyncadd [#allocation6], 4294961152  ;;  %v82_v0 = vld [vmem:[#allocation5 + $0x80] sm:$0xff]  ;;  %v83_v1 = vld [vmem:[#allocation5 + $0x88] sm:$0xff]  ;;  %s578_s10 = smov [#allocation8]  }
  0x38   :  { %v66_v2 = vld [vmem:[#allocation5] sm:$0xff]  ;;  %v401_v3 = vpack.c.bf16 %v83_v1, %v82_v0  ;;  %v67_v4 = vld [vmem:[#allocation5 + $0x8] sm:$0xff]  ;;  %v84_v5 = vld [vmem:[#allocation5 + $0x90] sm:$0xff]  ;;  %s295_s11 = sshll.u32 %s578_s10, 4  ;;  %s296_s11 = int_to_ptr.vmem [resolvable:$true] %s295_s11 }
  0x39   :  { %v85_v6 = vld [vmem:[#allocation5 + $0x98] sm:$0xff]  ;;  %v403_v7 = vpack.c.bf16 %v67_v4, %v66_v2  ;;  %v68_v9 = vld [vmem:[#allocation5 + $0x10] sm:$0xff]  ;;  %v86_v11 = vld [vmem:[#allocation5 + $0xa0] sm:$0xff]  ;;  %s543_s12 = scalar_lea.vmem %s296_s11, 256  ;;  %p548_p11 = scmp.lt.s32.totalorder %s296_s11, %s296_s11 }
  0x3a   :  { %v405_v8 = vpack.c.bf16 %v85_v6, %v84_v5  ;;  %v69_v10 = vld [vmem:[#allocation5 + $0x18] sm:$0xff]  ;;  %402 = vmatprep.subr.bf16.mxu0 %v401_v3  ;;  %v87_v12 = vld [vmem:[#allocation5 + $0xa8] sm:$0xff]  ;;  %v70_v15 = vld [vmem:[#allocation5 + $0x20] sm:$0xff]  ;;  %p544_p10 = scmp.ne.s32.totalorder %s296_s11, %s543_s12  ;;  %p549_p12 = scmp.lt.s32.totalorder %s543_s12, %s543_s12 }
  0x3b   :  { %404 = vmatpush3.bf16.msra.mxu0 %v403_v7  ;;  %v407_v13 = vpack.c.bf16 %v69_v10, %v68_v9  ;;  %v409_v14 = vpack.c.bf16 %v87_v12, %v86_v11  ;;  %v71_v16 = vld [vmem:[#allocation5 + $0x28] sm:$0xff]  ;;  %v88_v17 = vld [vmem:[#allocation5 + $0xb0] sm:$0xff]  ;;  %v89_v18 = vld [vmem:[#allocation5 + $0xb8] sm:$0xff] }
  0x3c   :  { %406 = vmatprep.subr.bf16.mxu0 %v405_v8  ;;  %v411_v19 = vpack.c.bf16 %v71_v16, %v70_v15  ;;  %v413_v20 = vpack.c.bf16 %v89_v18, %v88_v17  ;;  %v72_v21 = vld [vmem:[#allocation5 + $0x30] sm:$0xff]  ;;  %v73_v22 = vld [vmem:[#allocation5 + $0x38] sm:$0xff]  ;;  %v90_v23 = vld [vmem:[#allocation5 + $0xc0] sm:$0xff]  ;;  %p550_p13 = por %p549_p12, %p548_p11 }
  0x3d   :  { %v91_v24 = vld [vmem:[#allocation5 + $0xc8] sm:$0xff]  ;;  %v415_v26 = vpack.c.bf16 %v73_v22, %v72_v21  ;;  %v190_v27 = vld [vmem:[#allocation7] sm:$0xff]  ;;  %v192_v29 = vld [vmem:[#allocation7 + $0x10] sm:$0xff] }
  0x3e   :  { %v63_v25 = vld [vmem:[#allocation2 + $0x8] sm:$0xff]  ;;  %v417_v30 = vpack.c.bf16 %v91_v24, %v90_v23  ;;  %v74_v31 = vld [vmem:[#allocation5 + $0x40] sm:$0xff]  ;;  %v193_v34 = vld [vmem:[#allocation7 + $0x18] sm:$0xff]  ;;  %p551_p0 = pnand %p550_p13, %p544_p10 }
  0x3f   :  { %408 = vmatpush3.bf16.msra.mxu0 %v407_v13  ;;  %169 = vmatprep.mubr.f32.mxu0 %v63_v25  ;;  %v191_v28 = vld [vmem:[#allocation7 + $0x8] sm:$0xff]  ;;  %v92_v35 = vld [vmem:[#allocation5 + $0xd0] sm:$0xff]  ;;  %v93_v36 = vld [vmem:[#allocation5 + $0xd8] sm:$0xff]  ;;  %v437_v37 = vpack.c.bf16 %v193_v34, %v192_v29 }
  0x40   :  { %410 = vmatprep.subr.bf16.mxu0 %v409_v14  ;;  %v75_v32 = vld [vmem:[#allocation5 + $0x48] sm:$0xff]  ;;  %v433_v33 = vpack.c.bf16 %v191_v28, %v190_v27  ;;  %v421_v39 = vpack.c.bf16 %v93_v36, %v92_v35  ;;  %v76_v40 = vld [vmem:[#allocation5 + $0x50] sm:$0xff]  ;;  %v77_v41 = vld [vmem:[#allocation5 + $0x58] sm:$0xff] }
  0x41   :  { %v419_v38 = vpack.c.bf16 %v75_v32, %v74_v31  ;;  %v94_v42 = vld [vmem:[#allocation5 + $0xe0] sm:$0xff]  ;;  %v95_v43 = vld [vmem:[#allocation5 + $0xe8] sm:$0xff]  ;;  %v423_v44 = vpack.c.bf16 %v77_v41, %v76_v40  ;;  %v96_v48 = vld [vmem:[#allocation5 + $0xf0] sm:$0xff] }
  0x42   :  { %434 = vmatprep.subr.bf16.mxu1 %v433_v33  ;;  %v425_v45 = vpack.c.bf16 %v95_v43, %v94_v42  ;;  %v78_v46 = vld [vmem:[#allocation5 + $0x60] sm:$0xff]  ;;  %v79_v47 = vld [vmem:[#allocation5 + $0x68] sm:$0xff]  ;;  %v97_v49 = vld [vmem:[#allocation5 + $0xf8] sm:$0xff] }
  0x43   :  { %412 = vmatpush3.bf16.msra.mxu0 %v411_v19  ;;  %436 = vmatpush3.bf16.msra.mxu1 %v433_v33  ;;  %v427_v50 = vpack.c.bf16 %v79_v47, %v78_v46  ;;  %v429_v51 = vpack.c.bf16 %v97_v49, %v96_v48  ;;  %v80_v52 = vld [vmem:[#allocation5 + $0x70] sm:$0xff]  ;;  %v81_v53 = vld [vmem:[#allocation5 + $0x78] sm:$0xff]  ;;  %v62_v55 = vld [vmem:[#allocation2] sm:$0xff] }
  0x44   :  { %414 = vmatprep.subr.bf16.mxu0 %v413_v20  ;;  %438 = vmatprep.subr.bf16.mxu1 %v437_v37  ;;  %v431_v54 = vpack.c.bf16 %v81_v53, %v80_v52  ;;  %v65_v56 = vld [vmem:[#allocation2 + $0x18] sm:$0xff]  ;;  %v64_v57 = vld [vmem:[#allocation2 + $0x10] sm:$0xff]  ;;  %v194_v58 = vld [vmem:[#allocation7 + $0x20] sm:$0xff] }
  0x45   :  { %v195_v59 = vld [vmem:[#allocation7 + $0x28] sm:$0xff]  ;;  %v196_v61 = vld [vmem:[#allocation7 + $0x30] sm:$0xff]  ;;  %v197_v62 = vld [vmem:[#allocation7 + $0x38] sm:$0xff] }
  0x46   :  { %v441_v60 = vpack.c.bf16 %v195_v59, %v194_v58  ;;  %v445_v63 = vpack.c.bf16 %v197_v62, %v196_v61  ;;  %v198_v0 = vld [vmem:[#allocation7 + $0x40] sm:$0xff]  ;;  %v199_v1 = vld [vmem:[#allocation7 + $0x48] sm:$0xff]  ;;  %v200_v3 = vld [vmem:[#allocation7 + $0x50] sm:$0xff] }
  0x47   :  { %416 = vmatpush3.bf16.msra.mxu0 %v415_v26  ;;  %440 = vmatpush3.bf16.msra.mxu1 %v437_v37  ;;  %v449_v2 = vpack.c.bf16 %v199_v1, %v198_v0  ;;  %v201_v4 = vld [vmem:[#allocation7 + $0x58] sm:$0xff]  ;;  %v202_v5 = vld [vmem:[#allocation7 + $0x60] sm:$0xff]  ;;  %v203_v7 = vld [vmem:[#allocation7 + $0x68] sm:$0xff] }
  0x48   :  { %418 = vmatprep.subr.bf16.mxu0 %v417_v30  ;;  %442 = vmatprep.subr.bf16.mxu1 %v441_v60  ;;  %v453_v6 = vpack.c.bf16 %v201_v4, %v200_v3  ;;  %v457_v8 = vpack.c.bf16 %v203_v7, %v202_v5  ;;  %v204_v9 = vld [vmem:[#allocation7 + $0x70] sm:$0xff]  ;;  %v205_v10 = vld [vmem:[#allocation7 + $0x78] sm:$0xff]  ;;  %v308_v13 = vld [vmem:[%s674_s2] ss:$0 sm:$0xff] }
  0x49   :  { %v461_v11 = vpack.c.bf16 %v205_v10, %v204_v9  ;;  %v309_v31 = vld [vmem:[%s676_s4] ss:$0 sm:$0xff] }
  0x4b   :  { %420 = vmatpush3.bf16.msra.mxu0 %v419_v38  ;;  %444 = vmatpush3.bf16.msra.mxu1 %v441_v60 }
  0x4c   :  { %422 = vmatprep.subr.bf16.mxu0 %v421_v39  ;;  %446 = vmatprep.subr.bf16.mxu1 %v445_v63 }
  0x4f   :  { %424 = vmatpush3.bf16.msra.mxu0 %v423_v44  ;;  %448 = vmatpush3.bf16.msra.mxu1 %v445_v63 }
  0x50   :  { %426 = vmatprep.subr.bf16.mxu0 %v425_v45  ;;  %450 = vmatprep.subr.bf16.mxu1 %v449_v2 }
  0x53   :  { %428 = vmatpush3.bf16.msra.mxu0 %v427_v50  ;;  %452 = vmatpush3.bf16.msra.mxu1 %v449_v2 }
  0x54   :  { %430 = vmatprep.subr.bf16.mxu0 %v429_v51  ;;  %454 = vmatprep.subr.bf16.mxu1 %v453_v6 }
  0x57   :  { %432 = vmatpush3.bf16.msra.mxu0 %v431_v54  ;;  %456 = vmatpush3.bf16.msra.mxu1 %v453_v6 }
  0x58   :  { %458 = vmatprep.subr.bf16.mxu1 %v457_v8 }
  0x5a   :  { %170 = vmatmul.mubr.f32.vlgmr.msra.gmra.mrb[0].mxu0 %v62_v55 }
  0x5b   :  { %174 = vmatprep.mubr.f32.mxu0 %v65_v56  ;;  %460 = vmatpush3.bf16.msra.mxu1 %v457_v8 }
  0x5c   :  { %462 = vmatprep.subr.bf16.mxu1 %v461_v11 }
  0x5e   :  { %175 = vmatmul.mubr.f32.gmra.mrb[2].mxu0 %v64_v57 }
  0x5f   :  { %464 = vmatpush3.bf16.msra.mxu1 %v461_v11 }
 0x12d   :  { %v342_v12 = vpop.f32.mrb[0].mxu0 }
 0x12e   :  { %v343_v14 = vpop.f32.mrb[1].mxu0 }
 0x12f   :  { %v344_v15 = vadd.f32 %v343_v14, %v342_v12 }
 0x131   :  { %v172_v16 = vadd.f32 %v344_v15, %v308_v13  ;;  %v345_v17 = vpop.f32.mrb[2].mxu0 }
 0x132   :  { %v346_v18 = vpop.f32.mrb[3].mxu0 }
 0x133   :  { %v182_v19 = vmul.f32 0.70710677, %v172_v16  ;;  %v347_v20 = vadd.f32 %v346_v18, %v345_v17  ;;  %v180_v24 = vmul.f32 0.5, %v172_v16 }
 0x135   :  { %v177_v21 = vadd.f32 %v347_v20, %v308_v13  ;;  %473 = verf.f32 %v182_v19 }
 0x137   :  { %v183_v22 = vmul.f32 0.70710677, %v177_v21  ;;  %v181_v28 = vmul.f32 0.5, %v177_v21 }
 0x139   :  { %475 = verf.f32 %v183_v22 }
 0x13f   :  { %v474_v23 = vpop.eup %473 }
 0x140   :  { %v186_v25 = vadd.f32 1.0, %v474_v23 }
 0x142   :  { %v188_v26 = vmul.f32 %v186_v25, %v180_v24 }
 0x143   :  { %v476_v27 = vpop.eup %475 }
 0x144   :  { %398 = vmatprep.mubr.f32.mxu1 %v188_v26  ;;  %v187_v29 = vadd.f32 1.0, %v476_v27 }
 0x146   :  { %v189_v30 = vmul.f32 %v187_v29, %v181_v28 }
 0x148   :  { %399 = vmatmul.mubr.f32.vlgmr.msra.gmra.mrb[0].mxu1 %v189_v30 }
 0x21b   :  { %v400_v32 = vpop.f32.mrb[0].mxu1 }
 0x21c   :  { %v285_v33 = vadd.f32 %v400_v32, %v309_v31  ;;  %v279_v34 = vpop.f32.mrb[1].mxu1 }
 0x21d   :  { %v280_v35 = vadd.f32 %v309_v31, %v279_v34 }
 0x21e   :  { %289 = vst [vmem:[#allocation8 + $0x8] sm:$0xff] %v285_v33 }
 0x21f   :  { %288 = vst [vmem:[#allocation8] sm:$0xff] %v280_v35 }
 0x220   :  { %554 = shalt.err (!%p551_p0)
}
 0x221   :  { %s555_s4 = scalar_lea.hbm %s677_s5, 256 }
 0x222   :  { %p556_p1 = scmp.ne.s32.totalorder %s677_s5, %s555_s4  ;;  %p559_p2 = scmp.lt.u32.totalorder %s555_s4, %s677_s5 }
 0x224   :  { %p561_p3 = pnand %p559_p2, %p556_p1 }
 0x226   :  { %564 = shalt.err (!%p561_p3)
}
 0x227   :  { %301 = dma.vmem_to_hbm [thread:$0]  %s296_s11, 256, %s677_s5, [#allocation4], %s572_s28, %s572_s28, %s573_s29  }
 0x228   :  { %569 = dma.done.wait [#allocation4], 256  }
 0x229   :  { %570 = vsyncadd [#allocation4], 4294967040 }
 0x22a   :  { %305 = vsyncpa [#allocation3], 1 }
 0x22b   :  { %306 = vsyncpa [#allocation6], 1 }
 0x22c   :  { %307 = vsyncpa [#allocation4], 1 }

</bundles_post_ra>
